<compile_context>
chip_gen: v6e
topology: v6e:2x2x1
jax: 0.10.0
libtpu: 0.0.40
codegen_flags: <defaults>
</compile_context>

<pallas_src>
import functools

import jax
import jax.numpy as jnp
from jax.experimental import pallas as pl
from jax.experimental.pallas import tpu as pltpu

_EPS = 1e-08
_NEG_BIG = 1.0e9


def _round_up(x, m):
    return ((x + m - 1) // m) * m


def _vmem_capacity_bytes():
    """Physical VMEM of the current chip, conservative fallback = v7x 64 MiB."""
    try:
        return int(pltpu.get_tpu_info().vmem_capacity_bytes)
    except Exception:
        return 64 << 20


def _choose_tiles(B, T, E, itemsize, budget_bytes):
    """Pick (batch_block, seq_block) so the streaming tile + its f32
    intermediates fit inside budget_bytes (using VMEM-padded dims)."""
    pE = _round_up(E, 128)
    pT = _round_up(T, 8)
    # Per-element VMEM cost: double-buffered input tile + ~3 tile-sized f32
    # temporaries (cast, where, reduce) created inside the kernel body.
    per_elem = 2 * itemsize + 12
    max_elems = max(1, budget_bytes // per_elem)

    rows_full_t = max_elems // max(1, pT * pE)
    if rows_full_t >= min(8, B):
        tb = min(B, rows_full_t)
        tt = T
    else:
        # A single full-T row block is too big: block over T as well.
        tb = min(B, 8)
        tt = max(8, (max_elems // max(1, 8 * pE)) // 8 * 8)
        tt = min(tt, T)

    # Ensure >= 2 batch blocks when B is large enough so v7x's two
    # TensorCores both get work on the "parallel" batch axis.
    if B >= 16:
        tb = min(tb, max(8, ((B // 2) // 8) * 8))
    return int(tb), int(tt)


def _make_kernel(mode: str, seq_len: int, t_ragged: bool):
    """Build the pooling kernel for a static mode / seq length."""

    def kernel(len_ref, emb_ref, out_ref, acc_ref):
        # len_ref: VMEM [tb, 1] int32 lengths for this batch block
        # emb_ref: VMEM [tb, tt, E] embeddings for this (batch, seq) block
        # out_ref: VMEM [tb, E]   (resident across the seq grid axis)
        # acc_ref: VMEM [tb, E] float32 accumulator scratch
        j = pl.program_id(1)
        nt = pl.num_programs(1)

        @pl.when(j == 0)
        def _init():
            if mode == 'max':
                acc_ref[...] = jnp.full(acc_ref.shape, -jnp.inf, acc_ref.dtype)
            else:
                acc_ref[...] = jnp.zeros_like(acc_ref)

        emb = emb_ref[...].astype(jnp.float32)        # (tb, tt, E), f32 accum
        lengths = len_ref[...]                        # (tb, 1) int32
        tb, tt, _ = emb.shape

        # Global sequence index of each position in this T block.
        seq_idx = j * tt + jax.lax.broadcasted_iota(jnp.int32, (tb, tt, 1), 1)
        mask = seq_idx < lengths.reshape(tb, 1, 1)    # (tb, tt, 1) bool

        if mode == 'max':
            if t_ragged:
                # Last T block reads past T: replace garbage (possibly NaN)
                # so it can never win the max.
                emb = jnp.where(seq_idx < seq_len, emb, jnp.float32(0.0))
            # torch-exact: hist = emb - (1 - mask) * 1e9
            vals = jnp.where(mask, emb, emb - jnp.float32(_NEG_BIG))
            acc_ref[...] = jnp.maximum(acc_ref[...], jnp.max(vals, axis=1))
        else:
            acc_ref[...] += jnp.sum(
                jnp.where(mask, emb, jnp.float32(0.0)), axis=1)

        @pl.when(j == nt - 1)
        def _finalize():
            res = acc_ref[...]
            if mode == 'mean':
                res = res / (lengths.astype(jnp.float32) + jnp.float32(_EPS))
            out_ref[...] = res.astype(out_ref.dtype)

    return kernel


@functools.partial(jax.jit, static_argnames=('mode', 'block_b', 'block_t'))
def sequence_pooling(uiseq_embed_list, user_behavior_length, mode='mean',
                     block_b=None, block_t=None):
    """Pallas equivalent of SequencePoolingLayer(mode, support_masking=False).

    uiseq_embed_list:     [B, T, E] float
    user_behavior_length: [B, 1] (or [B]) integer lengths
    returns:              [B, 1, E] same dtype as the embeddings
    """
    if mode not in ('sum', 'mean', 'max'):
        raise ValueError('parameter mode should in [sum, mean, max]')

    B, T, E = uiseq_embed_list.shape
    dtype = uiseq_embed_list.dtype
    itemsize = jnp.dtype(dtype).itemsize

    vmem_cap = _vmem_capacity_bytes()
    # Tile + temporaries budget: ~55% of physical VMEM (35 MiB on v7x's
    # 64 MiB, ~70 MiB on v5e/v6e's 128 MiB); vmem limit capped at ~75%.
    tile_budget = max(24 << 20, min(int(vmem_cap * 0.55), 72 << 20))

    tb, tt = _choose_tiles(B, T, E, itemsize, tile_budget)
    if block_b is not None:
        tb = int(block_b)
    if block_t is not None:
        tt = int(block_t)

    # Enforce TPU block constraints: a blocked dim sitting in the second-to-
    # last position must be a multiple of 8 or equal to the full dim.
    tb = max(1, min(tb, B))
    tt = max(1, min(tt, T))
    if tb < B:
        tb = B if B < 8 else max(8, (tb // 8) * 8)
    if tt < T:
        tt = T if T < 8 else max(8, (tt // 8) * 8)

    nb = pl.cdiv(B, tb)
    nt = pl.cdiv(T, tt)
    t_ragged = (T % tt) != 0

    # VMEM accounting with layout padding (lanes -> 128, sublanes -> 8).
    pE = _round_up(E, 128)
    p_tt = _round_up(tt, 8)
    p_tb = _round_up(tb, 8)
    tile_in = tb * p_tt * pE * itemsize
    tile_len = p_tb * 128 * 4
    tile_out = p_tb * pE * itemsize
    acc_bytes = p_tb * pE * 4
    interm = 3 * tb * p_tt * pE * 4            # f32 cast/where/reduce temps
    need = 2 * (tile_in + tile_len) + 2 * tile_out + acc_bytes + interm \
        + (2 << 20)
    vmem_limit = int(min(int(vmem_cap * 0.75), max(16 << 20, need)))

    lengths = user_behavior_length.astype(jnp.int32).reshape(B, 1)

    cost = pl.CostEstimate(
        flops=2 * B * T * E,
        transcendentals=0,
        bytes_accessed=B * T * E * itemsize + B * E * itemsize + B * 4)

    out2d = pl.pallas_call(
        _make_kernel(mode, T, t_ragged),
        out_shape=jax.ShapeDtypeStruct((B, E), dtype),
        grid=(nb, nt),
        in_specs=[
            pl.BlockSpec((tb, 1), lambda i, j: (i, 0)),        # lengths
            pl.BlockSpec((tb, tt, E), lambda i, j: (i, j, 0)),  # embeddings
        ],
        out_specs=pl.BlockSpec((tb, E), lambda i, j: (i, 0)),
        scratch_shapes=[pltpu.VMEM((tb, E), jnp.float32)],
        compiler_params=pltpu.CompilerParams(
            dimension_semantics=("parallel", "arbitrary"),
            vmem_limit_bytes=vmem_limit),
        cost_estimate=cost,
    )(lengths, uiseq_embed_list)

    # Layout plumbing in the wrapper: (B, E) -> (B, 1, E)
    return out2d[:, None, :]


def _reference(emb, lengths, mode):
    """Pure-JAX reference reproducing the PyTorch forward exactly."""
    B, T, E = emb.shape
    row = jnp.arange(T)[None, None, :]                       # [1,1,T]
    mask = (row < lengths[:, :, None]).astype(jnp.float32)   # [B,1,T]
    mask = jnp.transpose(mask, (0, 2, 1))                    # [B,T,1]
    mask = jnp.repeat(mask, E, axis=2)                       # [B,T,E]
    if mode == 'max':
        hist = emb - (1.0 - mask) * _NEG_BIG
        return jnp.max(hist, axis=1, keepdims=True)
    hist = jnp.sum(emb * mask, axis=1)                       # [B,E]
    if mode == 'mean':
        hist = hist / (lengths.astype(jnp.float32) + _EPS)
    return hist[:, None, :]                                  # [B,1,E]


if __name__ == "__main__":
    key = jax.random.PRNGKey(0)

    ok = True
    cases = [
        # (B, T, E, block_b, block_t)
        (2, 8, 32, None, None),     # tiny batch, single block
        (20, 8, 32, None, None),    # ragged final batch block (20 = 8+8+4)
        (12, 20, 32, 8, 8),         # forced small blocks: ragged B and T axes
    ]
    for (B, T, E, bb, bt) in cases:
        k1, k2 = jax.random.split(jax.random.fold_in(key, B * 1000 + T))
        emb = jax.random.normal(k1, (B, T, E), dtype=jnp.float32)
        lengths = jax.random.randint(k2, (B, 1), minval=1, maxval=T + 1,
                                     dtype=jnp.int32)

        for mode in ('sum', 'mean', 'max'):
            out = sequence_pooling(emb, lengths, mode=mode,
                                   block_b=bb, block_t=bt)
            out = jax.block_until_ready(out)
            ref = _reference(emb, lengths, mode)
            assert out.shape == (B, 1, E)
            if not jnp.allclose(out, ref, atol=1e-5, rtol=1e-5):
                ok = False
                print(f"mismatch in mode={mode} shape={(B, T, E)}")

    if ok:
        print("KERNEL_OK")
</pallas_src>

<mosaic_0001>
module attributes {stable_mosaic.version = 11 : i64} {
  func.func @kernel(%arg0: i32, %arg1: i32, %arg2: memref<2x1xi32, #tpu.memory_space<vmem>>, %arg3: memref<2x8x32xf32, #tpu.memory_space<vmem>>, %arg4: memref<2x32xf32, #tpu.memory_space<vmem>>, %arg5: memref<2x32xf32, #tpu.memory_space<vmem>>) attributes {dimension_semantics = [#tpu.dimension_semantics<parallel>, #tpu.dimension_semantics<arbitrary>], iteration_bounds = array<i64: 1, 1>, scalar_prefetch = 0 : i64, scratch_operands = 1 : i64, tpu.core_type = #tpu.core_type<tc>, window_params = [{transform_indices = @transform_0, window_bounds = array<i64: 2, 1>}, {transform_indices = @transform_1, window_bounds = array<i64: 2, 8, 32>}, {transform_indices = @transform_2, window_bounds = array<i64: 2, 32>}]} {
    %c0_i32 = arith.constant 0 : i32
    %0 = arith.cmpi eq, %arg1, %c0_i32 : i32
    %1 = arith.extui %0 : i1 to i32
    %c0_i32_0 = arith.constant 0 : i32
    %2 = arith.cmpi ne, %1, %c0_i32_0 : i32
    scf.if %2 {
      %cst_12 = arith.constant 0.000000e+00 : f32
      %23 = vector.broadcast %cst_12 : f32 to vector<2x32xf32>
      %c0_13 = arith.constant 0 : index
      %c0_14 = arith.constant 0 : index
      %24 = vector.load %arg5[%c0_13, %c0_14] : memref<2x32xf32, #tpu.memory_space<vmem>>, vector<2x32xf32>
      tpu.vector_store %arg5[%c0_13, %c0_14], %23 {strides = array<i32>} : memref<2x32xf32, #tpu.memory_space<vmem>>, vector<2x32xf32>,
    } else {
    }
    %c0 = arith.constant 0 : index
    %c0_1 = arith.constant 0 : index
    %c0_2 = arith.constant 0 : index
    %3 = vector.load %arg3[%c0, %c0_1, %c0_2] : memref<2x8x32xf32, #tpu.memory_space<vmem>>, vector<2x8x32xf32>
    %c0_3 = arith.constant 0 : index
    %c0_4 = arith.constant 0 : index
    %4 = vector.load %arg2[%c0_3, %c0_4] : memref<2x1xi32, #tpu.memory_space<vmem>>, vector<2x1xi32>
    %c8_i32 = arith.constant 8 : i32
    %5 = arith.muli %arg1, %c8_i32 : i32
    %6 = tpu.iota {dimensions = array<i32: 1>} : vector<2x8x1xi32>
    %7 = vector.broadcast %5 : i32 to vector<2x8x1xi32>
    %8 = arith.addi %7, %6 : vector<2x8x1xi32>
    %9 = vector.shape_cast %4 : vector<2x1xi32> to vector<2x1x1xi32>
    %10 = vector.broadcast %9 : vector<2x1x1xi32> to vector<2x8x1xi32>
    %11 = arith.cmpi slt, %8, %10 : vector<2x8x1xi32>
    %c0_5 = arith.constant 0 : index
    %c0_6 = arith.constant 0 : index
    %12 = vector.load %arg5[%c0_5, %c0_6] : memref<2x32xf32, #tpu.memory_space<vmem>>, vector<2x32xf32>
    %cst = arith.constant 0.000000e+00 : f32
    %13 = vector.shape_cast %11 : vector<2x8x1xi1> to vector<2x8x1xi1>
    %14 = vector.broadcast %13 : vector<2x8x1xi1> to vector<2x8x32xi1>
    %15 = vector.broadcast %cst : f32 to vector<2x8x32xf32>
    %16 = arith.select %14, %3, %15 : vector<2x8x32xi1>, vector<2x8x32xf32>
    %cst_7 = arith.constant dense<0.000000e+00> : vector<2x32xf32>
    %17 = vector.multi_reduction <add>, %16, %cst_7 [1] : vector<2x8x32xf32> to vector<2x32xf32>
    %18 = arith.addf %12, %17 : vector<2x32xf32>
    %c0_8 = arith.constant 0 : index
    %c0_9 = arith.constant 0 : index
    %19 = vector.load %arg5[%c0_8, %c0_9] : memref<2x32xf32, #tpu.memory_space<vmem>>, vector<2x32xf32>
    tpu.vector_store %arg5[%c0_8, %c0_9], %18 {strides = array<i32>} : memref<2x32xf32, #tpu.memory_space<vmem>>, vector<2x32xf32>,
    %c0_i32_10 = arith.constant 0 : i32
    %20 = arith.cmpi eq, %arg1, %c0_i32_10 : i32
    %21 = arith.extui %20 : i1 to i32
    %c0_i32_11 = arith.constant 0 : i32
    %22 = arith.cmpi ne, %21, %c0_i32_11 : i32
    scf.if %22 {
      %c0_12 = arith.constant 0 : index
      %c0_13 = arith.constant 0 : index
      %23 = vector.load %arg5[%c0_12, %c0_13] : memref<2x32xf32, #tpu.memory_space<vmem>>, vector<2x32xf32>
      %c0_14 = arith.constant 0 : index
      %c0_15 = arith.constant 0 : index
      %24 = vector.load %arg4[%c0_14, %c0_15] : memref<2x32xf32, #tpu.memory_space<vmem>>, vector<2x32xf32>
      tpu.vector_store %arg4[%c0_14, %c0_15], %23 {strides = array<i32>} : memref<2x32xf32, #tpu.memory_space<vmem>>, vector<2x32xf32>,
    } else {
    }
    return
  }
  func.func @transform_0(%arg0: i32, %arg1: i32) -> (i32, i32) {
    %c0_i32 = arith.constant 0 : i32
    %c0_i32_0 = arith.constant 0 : i32
    return %arg0, %c0_i32 : i32, i32
  }
  func.func @transform_1(%arg0: i32, %arg1: i32) -> (i32, i32, i32) {
    %c0_i32 = arith.constant 0 : i32
    %c0_i32_0 = arith.constant 0 : i32
    return %arg0, %arg1, %c0_i32 : i32, i32, i32
  }
  func.func @transform_2(%arg0: i32, %arg1: i32) -> (i32, i32) {
    %c0_i32 = arith.constant 0 : i32
    %c0_i32_0 = arith.constant 0 : i32
    return %arg0, %c0_i32 : i32, i32
  }
}

</mosaic_0001>

<bundles_post_ra>
// kernel: sequence_pooling.1
= control target key start
LH: loop header
LB: loop body
LE: loop exit
PB: predicated region body
PF: predicated region fallthrough
CT: control target
= control target key end

     0   :  { %7 = vsyncpa [#allocation4], 0  ;;  %s215_s0 = inlined_call_operand.vmem [shape: s32[2,1], index: 0, kind: input, shape index: {}]   ;;  %s216_s1 = inlined_call_operand.hbm [shape: f32[2,8,32], index: 1, kind: input, shape index: {}]   ;;  %s217_s2 = inlined_call_operand.hbm [shape: f32[2,32], index: 2, kind: output, shape index: {}]  }
   0x1   :  { %8 = vsyncpa [#allocation5], 0  ;;  %s181_s9 = smov [#allocation3]  }
   0x2   :  { %s16_s10 = sshll.u32 %s181_s9, 4  ;;  %s17_s10 = int_to_ptr.vmem [resolvable:$true] %s16_s10 }
   0x3   :  { %s145_s11 = scalar_lea.vmem %s17_s10, 256  ;;  %p150_p1 = scmp.lt.s32.totalorder %s17_s10, %s17_s10 }
   0x4   :  { %p146_p0 = scmp.ne.s32.totalorder %s17_s10, %s145_s11  ;;  %p151_p2 = scmp.lt.s32.totalorder %s145_s11, %s145_s11 }
   0x6   :  { %p152_p3 = por %p151_p2, %p150_p1 }
   0x8   :  { %p153_p4 = pnand %p152_p3, %p146_p0 }
   0xa   :  { %156 = shalt.err (!%p153_p4)
}
   0xb   :  { %s182_s12 = smov 128   ;;  %s183_s13 = smov 8  }
   0xc   :  { %22 = dma.hbm_to_vmem [thread:$0]  %s216_s1, 256, %s17_s10, [#allocation4], %s182_s12, %s182_s12, %s183_s13  }
   0xd   :  { %177 = dma.done.wait [#allocation4], 256  }
   0xe   :  { %178 = vsyncadd [#allocation4], 4294967040  ;;  %v36_v0 = vlaneseq  ;;  %v184_v1 = vmov 0   ;;  %v185_v2 = vmov 1966171168   ;;  %vm30_vm2 = vcmask 254976  }
   0xf   :  { %136 = vset.pattern.permute.xlu0 %v184_v1  ;;  %v49_v3 = vunpack.c.l.s4 %v185_v2  ;;  %v128_v8 = vld.sshfl [vmem:[%s215_s0] sm:$0x11 pattern:$0x75316420]  ;;  %v186_v16 = vmov 0.0   ;;  %v32_v17 = vld [vmem:[#allocation3] sm:$0xff] }
  0x10   :  { %v37_v4 = vshrl.u32 %v36_v0, 7  ;;  %v47_v10 = vcombine.high %v128_v8, %v128_v8  ;;  %31 = vst.msk [vmem:[#allocation2] sm:$0x3] %vm30_vm2, %v186_v16  ;;  %vm85_vm3 = vcmask 261120   ;;  %v33_v21 = vld [vmem:[#allocation3 + $0x8] sm:$0xff]  ;;  %vm102_vm6 = vcmask 1041409  }
  0x11   :  { %v50_v5 = vunpack.c.0.s8 %v49_v3  ;;  %s187_s0 = smov [#allocation6]  }
  0x12   :  { %v64_v7 = vsub.s32 0, %v37_v4  ;;  %s119_s1 = sshll.u32 %s187_s0, 4  ;;  %s120_s1 = int_to_ptr.vmem [resolvable:$true] %s119_s1 }
  0x13   :  { %v53_v6 = vsub.s32 %v50_v5, %v37_v4  ;;  %s157_s18 = scalar_lea.vmem %s120_s1, 32  ;;  %p162_p6 = scmp.lt.s32.totalorder %s120_s1, %s120_s1 }
  0x14   :  { %p158_p5 = scmp.ne.s32.totalorder %s120_s1, %s157_s18  ;;  %p163_p7 = scmp.lt.s32.totalorder %s157_s18, %s157_s18 }
  0x15   :  { %v54_v9 = vrot.slane %v128_v8, %v53_v6  ;;  %v61_v12 = vrot.slane %v47_v10, %v53_v6 }
  0x16   :  { %p164_p8 = por %p163_p7, %p162_p6 }
  0x17   :  { %v65_v11 = vrot.slane %v54_v9, %v64_v7  ;;  %v69_v13 = vrot.slane %v61_v12, %v64_v7  ;;  %v72_v37 = vld [vmem:[#allocation2] sm:$0x3] }
  0x18   :  { %p165_p9 = pnand %p164_p8, %p158_p5 }
  0x19   :  { %vm70_vm0 = vcmp.lt.s32.totalorder %v37_v4, %v65_v11  ;;  %vm71_vm1 = vcmp.lt.s32.totalorder %v37_v4, %v69_v13 }
  0x1a   :  { %v73_v14 = vsel %vm70_vm0, 1, %v184_v1  ;;  %v74_v15 = vsel %vm71_vm1, 1, %v184_v1 }
  0x1b   :  { %76 = vperm.xlu0 %136, %v73_v14  }
  0x1f   :  { %79 = vperm.xlu0 %136, %v74_v15  }
  0x96   :  { %v77_v18 = vpop.permute.xlu0 %76 }
  0x97   :  { %vm81_vm4 = vcmp.eq.s32.totalorder %v77_v18, 1 }
  0x98   :  { %v83_v19 = vsel %vm81_vm4, %v32_v17, 0.0 }
  0x99   :  { %v86_v20 = vsel %vm85_vm3, %v83_v19, 0.0 }
  0x9a   :  { %v87_v22 = vrot.slane %v86_v20, 4  ;;  %v80_v23 = vpop.permute.xlu0 %79 }
  0x9b   :  { %vm82_vm5 = vcmp.eq.s32.totalorder %v80_v23, 1 }
  0x9c   :  { %v88_v24 = vadd.f32 %v87_v22, %v86_v20  ;;  %v84_v25 = vsel %vm82_vm5, %v33_v21, 0.0 }
  0x9d   :  { %v93_v26 = vsel %vm85_vm3, %v84_v25, 0.0 }
  0x9e   :  { %v89_v27 = vrot.slane %v88_v24, 2  ;;  %v94_v28 = vrot.slane %v93_v26, 4 }
  0xa0   :  { %v90_v29 = vadd.f32 %v89_v27, %v88_v24  ;;  %v95_v30 = vadd.f32 %v94_v28, %v93_v26 }
  0xa2   :  { %v96_v31 = vrot.slane %v95_v30, 2  ;;  %v91_v32 = vrot.slane %v90_v29, 1 }
  0xa4   :  { %v97_v33 = vadd.f32 %v96_v31, %v95_v30  ;;  %v92_v35 = vadd.f32 %v91_v32, %v90_v29 }
  0xa6   :  { %v98_v34 = vrot.slane %v97_v33, 1 }
  0xa8   :  { %v99_v36 = vadd.f32 %v98_v34, %v97_v33 }
  0xaa   :  { %v103_v38 = vsel %vm102_vm6, %v99_v36, %v92_v35 }
  0xab   :  { %v105_v39 = vadd.f32 %v103_v38, %v72_v37 }
  0xad   :  { %107 = vst.msk [vmem:[#allocation2] sm:$0x3] %vm30_vm2, %v105_v39 }
  0xb4   :  { %v111_v40 = vld [vmem:[#allocation2] sm:$0x3] }
  0xb5   :  { %112 = vst.msk [vmem:[#allocation6] sm:$0x3] %vm30_vm2, %v111_v40 }
  0xb6   :  { %168 = shalt.err (!%p165_p9)
}
  0xb7   :  { %122 = dma.vmem_to_hbm [thread:$0]  %s120_s1, 32, %s217_s2, [#allocation5]  }
  0xb8   :  { %179 = dma.done.wait [#allocation5], 32  }
  0xb9   :  { %180 = vsyncadd [#allocation5], 4294967264 }
  0xba   :  { %126 = vsyncpa [#allocation4], 1 }
  0xbb   :  { %127 = vsyncpa [#allocation5], 1 }

</bundles_post_ra>
